<compile_context>
chip_gen: v5e
topology: v5e:2x2
jax: 0.10.0
libtpu: 0.0.40
codegen_flags: <defaults>
</compile_context>

<pallas_src>
import jax
import jax.numpy as jnp
from jax.experimental import pallas as pl
from jax.experimental.pallas import tpu as pltpu


# -----------------------------------------------------------------------------
# Pallas kernel: fused  Linear -> ReLU -> (Linear∘fc folded)
# -----------------------------------------------------------------------------
def mainmodel_kernel(x_ref, w1_ref, b1_ref, w23_ref, b23_ref, o_ref):
    x = x_ref[...]                                            # (tm, F_in)

    # seq[0]: nn.Linear(F_in, H1)  +  seq[1]: nn.ReLU()   (epilogue in f32)
    h1 = jnp.dot(x, w1_ref[...], preferred_element_type=jnp.float32)
    h1 = jnp.maximum(h1 + b1_ref[...], 0.0)                   # (tm, H1) f32

    # seq[2] ∘ fc, folded offline to one (H1, O) matmul, f32 accumulation
    out = jnp.dot(h1.astype(w23_ref.dtype), w23_ref[...],
                  preferred_element_type=jnp.float32)
    out = out + b23_ref[...]                                  # (tm, O) f32

    # TODO(synk): O=8 -> 8-of-128-lane masked store; lane-dense repack skipped
    # (output bytes are ~25% of the x stream; ragged-batch handling stays simple).
    o_ref[...] = out.astype(o_ref.dtype)


def _round_up(n, m):
    return ((n + m - 1) // m) * m


# -----------------------------------------------------------------------------
# One-time parameter preparation (hoisted out of the forward pass)
# -----------------------------------------------------------------------------
def prepare_params(params, param_dtype=jnp.float32):
    """Fold seq[2] and fc into one linear and cast weights once.

    params: dict with pre-transposed (in, out) weights w1/b1/w2/b2/wfc/bfc.
    param_dtype should match the dtype of x the caller will pass (f32 or bf16).
    Biases stay f32 (the kernel epilogue is f32).
    """
    w1 = params["w1"].astype(jnp.float32)
    b1 = params["b1"].astype(jnp.float32)
    w2 = params["w2"].astype(jnp.float32)
    b2 = params["b2"].astype(jnp.float32)
    wfc = params["wfc"].astype(jnp.float32)
    bfc = params["bfc"].astype(jnp.float32)

    w23 = w2 @ wfc                      # exact fold: no activation in between
    b23 = b2 @ wfc + bfc

    return dict(
        w1=w1.astype(param_dtype),
        w23=w23.astype(param_dtype),
        b1=b1,
        b23=b23,
    )


# -----------------------------------------------------------------------------
# Forward wrapper
# -----------------------------------------------------------------------------
def mainmodel_forward(x, prep, *, tm=None, out_dtype=None):
    """x: (N, F_in).  prep: output of prepare_params().  No x copies are made."""
    N, F_in = x.shape
    w1, b1, w23, b23 = prep["w1"], prep["b1"], prep["w23"], prep["b23"]
    H1, O = w1.shape[1], w23.shape[1]
    out_dtype = x.dtype if out_dtype is None else out_dtype
    itemsize = jnp.dtype(x.dtype).itemsize

    # ---- batch tile selection -------------------------------------------------
    if tm is None:
        if N <= 8:
            tm = N                                  # one exact block, no padding
        else:
            # Big tiles amortize the ~0.35us/step overhead.  Cap so that:
            #  (a) grid >= 2 steps when N allows (v7x: 2 TCs share the parallel
            #      batch axis; a 1-step grid idles one core),
            #  (b) double-buffered VMEM stays small: the (tm, F_in) x block and
            #      the (tm, O) out block both lane-pad to 128 lanes, so f32
            #      cost is ~tm*128*4*2 bytes each — ~4 MiB per stream at
            #      tm=4096, comfortably inside the 32 MiB scoped default on
            #      v5e/v6e and v7x's tighter 64 MiB physical VMEM.
            tm_max = 4096 if itemsize >= 4 else 8192
            tm = min(tm_max, _round_up(pl.cdiv(N, 2), 8))
    else:
        tm = max(8, _round_up(tm, 8))

    # Ragged batches: no jnp.pad of x (that would add a full extra HBM pass).
    # Pallas handles the partial last block: partial reads, masked writes.
    grid = (pl.cdiv(N, tm),)
    full = lambda i: (0, 0)          # weights / biases: one resident block

    cost = pl.CostEstimate(
        flops=2 * N * (F_in * H1 + H1 * O),
        transcendentals=0,
        bytes_accessed=(N * F_in * itemsize                              # x stream
                        + F_in * H1 * jnp.dtype(w1.dtype).itemsize       # w1
                        + H1 * O * jnp.dtype(w23.dtype).itemsize         # w23
                        + (H1 + O) * 4                                   # biases
                        + N * O * jnp.dtype(out_dtype).itemsize),        # out
    )

    return pl.pallas_call(
        mainmodel_kernel,
        out_shape=jax.ShapeDtypeStruct((N, O), out_dtype),
        grid_spec=pltpu.PrefetchScalarGridSpec(
            num_scalar_prefetch=0,
            grid=grid,
            in_specs=[
                pl.BlockSpec((tm, F_in), lambda i: (i, 0)),   # x tile (streamed)
                pl.BlockSpec((F_in, H1), full),               # w1 (resident)
                pl.BlockSpec((1, H1), full),                  # b1
                pl.BlockSpec((H1, O), full),                  # w23 (folded)
                pl.BlockSpec((1, O), full),                   # b23 (folded)
            ],
            out_specs=pl.BlockSpec((tm, O), lambda i: (i, 0)),
        ),
        compiler_params=pltpu.CompilerParams(
            dimension_semantics=("parallel",)),
        cost_estimate=cost,
    )(x, w1, b1, w23, b23)


# -----------------------------------------------------------------------------
# Deterministic parameter init (mimics nn.Linear's U(-1/sqrt(fan_in), +...))
# -----------------------------------------------------------------------------
def init_params(key, f_in, h1, h2, outseq):
    ks = jax.random.split(key, 6)

    def linear(kw, kb, fan_in, fan_out):
        bound = 1.0 / jnp.sqrt(fan_in)
        # stored as (fan_in, fan_out) == W^T of the PyTorch (out, in) layout
        w = jax.random.uniform(kw, (fan_in, fan_out), jnp.float32, -bound, bound)
        b = jax.random.uniform(kb, (1, fan_out), jnp.float32, -bound, bound)
        return w, b

    w1, b1 = linear(ks[0], ks[1], f_in, h1)
    w2, b2 = linear(ks[2], ks[3], h1, h2)
    wfc, bfc = linear(ks[4], ks[5], h2, outseq)
    return dict(w1=w1, b1=b1, w2=w2, b2=b2, wfc=wfc, bfc=bfc)


def reference_forward(x, p):
    h = jnp.maximum(x @ p["w1"] + p["b1"], 0.0)
    h = h @ p["w2"] + p["b2"]
    return h @ p["wfc"] + p["bfc"]


if __name__ == "__main__":
    # Small shapes: batch=16, in_features=32, hidden=64->32, outseq=8
    N, F_IN, H1, H2, OUTSEQ = 16, 32, 64, 32, 8

    key = jax.random.PRNGKey(0)
    kx, kp = jax.random.split(key)
    x = jax.random.normal(kx, (N, F_IN), jnp.float32)
    params = init_params(kp, F_IN, H1, H2, OUTSEQ)
    ref = reference_forward(x, params)

    # one-time parameter prep (fold + casts hoisted out of the forward)
    prep_f32 = prepare_params(params, jnp.float32)

    # f32 path: default tm -> tm=8, grid=2 for this toy N (exercises multi-step
    # pipeline and the v7x-friendly >=2-step parallel batch axis)
    out = jax.block_until_ready(mainmodel_forward(x, prep_f32))
    assert out.shape == (N, OUTSEQ)
    assert jnp.allclose(out, ref, atol=1e-4, rtol=1e-4)

    # ragged batch: N=13 -> partial last block, handled in-kernel (no pad copy)
    x_ragged = x[:13]
    out_r = jax.block_until_ready(mainmodel_forward(x_ragged, prep_f32))
    assert out_r.shape == (13, OUTSEQ)
    assert jnp.allclose(out_r, ref[:13], atol=1e-4, rtol=1e-4)

    # bf16 path: only taken when the CALLER already has bf16 x (no wrapper cast
    # of x inside mainmodel_forward — that would add an extra HBM pass).
    prep_bf16 = prepare_params(params, jnp.bfloat16)
    x_bf16 = x.astype(jnp.bfloat16)          # stand-in for "x arrives as bf16"
    out_bf16 = jax.block_until_ready(mainmodel_forward(x_bf16, prep_bf16))
    assert out_bf16.shape == (N, OUTSEQ)
    assert jnp.allclose(out_bf16.astype(jnp.float32), ref, atol=1e-1, rtol=1e-1)

    # TODO(synk): recurrent (LSTM/GRU), Conv1d and transpose/extract branches of
    # the config-driven builder are not instantiated here; only the Linear/ReLU
    # path is realized.
    print("KERNEL_OK")
</pallas_src>

<mosaic_0001>
module attributes {stable_mosaic.version = 11 : i64} {
  func.func @mainmodel_kernel(%arg0: i32, %arg1: memref<8x32xf32, #tpu.memory_space<vmem>>, %arg2: memref<32x64xf32, #tpu.memory_space<vmem>>, %arg3: memref<1x64xf32, #tpu.memory_space<vmem>>, %arg4: memref<64x8xf32, #tpu.memory_space<vmem>>, %arg5: memref<1x8xf32, #tpu.memory_space<vmem>>, %arg6: memref<8x8xf32, #tpu.memory_space<vmem>>) attributes {dimension_semantics = [#tpu.dimension_semantics<parallel>], iteration_bounds = array<i64: 2>, scalar_prefetch = 0 : i64, scratch_operands = 0 : i64, tpu.core_type = #tpu.core_type<tc>, window_params = [{transform_indices = @transform_0, window_bounds = array<i64: 8, 32>}, {pipeline_mode = #tpu.pipeline_mode<synchronous>, transform_indices = @transform_1, window_bounds = array<i64: 32, 64>}, {pipeline_mode = #tpu.pipeline_mode<synchronous>, transform_indices = @transform_2, window_bounds = array<i64: 1, 64>}, {pipeline_mode = #tpu.pipeline_mode<synchronous>, transform_indices = @transform_3, window_bounds = array<i64: 64, 8>}, {pipeline_mode = #tpu.pipeline_mode<synchronous>, transform_indices = @transform_4, window_bounds = array<i64: 1, 8>}, {transform_indices = @transform_5, window_bounds = array<i64: 8, 8>}]} {
    %c0 = arith.constant 0 : index
    %c0_0 = arith.constant 0 : index
    %0 = vector.load %arg1[%c0, %c0_0] : memref<8x32xf32, #tpu.memory_space<vmem>>, vector<8x32xf32>
    %c0_1 = arith.constant 0 : index
    %c0_2 = arith.constant 0 : index
    %1 = vector.load %arg2[%c0_1, %c0_2] : memref<32x64xf32, #tpu.memory_space<vmem>>, vector<32x64xf32>
    %cst = arith.constant dense<0.000000e+00> : vector<8x64xf32>
    %2 = tpu.matmul %0, %1, %cst {dimension_numbers = #tpu.dot_dimension_numbers<[1], [0], [0], [1], [0, 0, 1, 1], [], []>} : vector<8x32xf32>, vector<32x64xf32>, vector<8x64xf32> -> vector<8x64xf32>
    %c0_3 = arith.constant 0 : index
    %c0_4 = arith.constant 0 : index
    %3 = vector.load %arg3[%c0_3, %c0_4] : memref<1x64xf32, #tpu.memory_space<vmem>>, vector<1x64xf32>
    %4 = vector.broadcast %3 : vector<1x64xf32> to vector<8x64xf32>
    %5 = arith.addf %2, %4 : vector<8x64xf32>
    %cst_5 = arith.constant 0.000000e+00 : f32
    %6 = vector.broadcast %cst_5 : f32 to vector<8x64xf32>
    %7 = arith.maximumf %5, %6 : vector<8x64xf32>
    %c0_6 = arith.constant 0 : index
    %c0_7 = arith.constant 0 : index
    %8 = vector.load %arg4[%c0_6, %c0_7] : memref<64x8xf32, #tpu.memory_space<vmem>>, vector<64x8xf32>
    %cst_8 = arith.constant dense<0.000000e+00> : vector<8x8xf32>
    %9 = tpu.matmul %7, %8, %cst_8 {dimension_numbers = #tpu.dot_dimension_numbers<[1], [0], [0], [1], [0, 0, 1, 1], [], []>} : vector<8x64xf32>, vector<64x8xf32>, vector<8x8xf32> -> vector<8x8xf32>
    %c0_9 = arith.constant 0 : index
    %c0_10 = arith.constant 0 : index
    %10 = vector.load %arg5[%c0_9, %c0_10] : memref<1x8xf32, #tpu.memory_space<vmem>>, vector<1x8xf32>
    %11 = vector.broadcast %10 : vector<1x8xf32> to vector<8x8xf32>
    %12 = arith.addf %9, %11 : vector<8x8xf32>
    %c0_11 = arith.constant 0 : index
    %c0_12 = arith.constant 0 : index
    %13 = vector.load %arg6[%c0_11, %c0_12] : memref<8x8xf32, #tpu.memory_space<vmem>>, vector<8x8xf32>
    tpu.vector_store %arg6[%c0_11, %c0_12], %12 {strides = array<i32>} : memref<8x8xf32, #tpu.memory_space<vmem>>, vector<8x8xf32>,
    return
  }
  func.func @transform_0(%arg0: i32) -> (i32, i32) {
    %c0_i32 = arith.constant 0 : i32
    %c0_i32_0 = arith.constant 0 : i32
    return %arg0, %c0_i32 : i32, i32
  }
  func.func @transform_1(%arg0: i32) -> (i32, i32) {
    %c0_i32 = arith.constant 0 : i32
    %c0_i32_0 = arith.constant 0 : i32
    %c0_i32_1 = arith.constant 0 : i32
    return %c0_i32, %c0_i32_0 : i32, i32
  }
  func.func @transform_2(%arg0: i32) -> (i32, i32) {
    %c0_i32 = arith.constant 0 : i32
    %c0_i32_0 = arith.constant 0 : i32
    %c0_i32_1 = arith.constant 0 : i32
    return %c0_i32, %c0_i32_0 : i32, i32
  }
  func.func @transform_3(%arg0: i32) -> (i32, i32) {
    %c0_i32 = arith.constant 0 : i32
    %c0_i32_0 = arith.constant 0 : i32
    %c0_i32_1 = arith.constant 0 : i32
    return %c0_i32, %c0_i32_0 : i32, i32
  }
  func.func @transform_4(%arg0: i32) -> (i32, i32) {
    %c0_i32 = arith.constant 0 : i32
    %c0_i32_0 = arith.constant 0 : i32
    %c0_i32_1 = arith.constant 0 : i32
    return %c0_i32, %c0_i32_0 : i32, i32
  }
  func.func @transform_5(%arg0: i32) -> (i32, i32) {
    %c0_i32 = arith.constant 0 : i32
    %c0_i32_0 = arith.constant 0 : i32
    return %arg0, %c0_i32 : i32, i32
  }
}

</mosaic_0001>

<bundles_post_ra>
// kernel: tpu_custom_call.1
= control target key start
LH: loop header
LB: loop body
LE: loop exit
PB: predicated region body
PF: predicated region fallthrough
CT: control target
= control target key end

     0   :  { %s404_s18 = smov 0   ;;  %s466_s0 = inlined_call_operand.vmem [shape: f32[16,32], index: 0, kind: input, shape index: {}]   ;;  %s467_s1 = inlined_call_operand.vmem [shape: f32[32,64], index: 1, kind: input, shape index: {}]   ;;  %s468_s2 = inlined_call_operand.vmem [shape: f32[1,64], index: 2, kind: input, shape index: {}]   ;;  %s469_s3 = inlined_call_operand.vmem [shape: f32[64,8], index: 3, kind: input, shape index: {}]   ;;  %s470_s4 = inlined_call_operand.vmem [shape: f32[1,8], index: 4, kind: input, shape index: {}]   ;;  %s471_s5 = inlined_call_operand.vmem [shape: f32[16,8], index: 5, kind: output, shape index: {}]  }
   0x1 LB: > { %s345_s19 = sadd.s32 4294967295, %s372_s18   ;;  %p349_p0 = scmp.ge.s32.totalorder %s372_s18, 1  ;;  %s372_s18 = sphi %s404_s18, %s15_s18  }
   0x2   : > { %p186_p1 = scmp.lt.s32.totalorder %s372_s18, 3 }
   0x4   : > { %p187_p2 = pnand %p349_p0, %p186_p1 }
   0x5   : > { %p212_p3 = scmp.lt.s32.totalorder (!%p187_p2), %s345_s19, 1 }
   0x6   : > { %190 = sbr.rel (%p187_p2) target bundleno = 278 (0x116), region = 40 }
   0xb   : > { %v224_v0 = vld [vmem:[%s467_s1 + $0x18] sm:$0xff]  ;;  %v223_v1 = vld [vmem:[%s467_s1 + $0x10] sm:$0xff]  ;;  %v222_v4 = vld [vmem:[%s467_s1 + $0x8] sm:$0xff]  ;;  %s473_s19 = smov (!%p212_p3, %s345_s19), 1  ;;  %vm229_vm0 = vcmask 261120   ;;  %vm266_vm1 = vcmask 523264  }
   0xc   : > { %245 = vmatpush.msra.mxu0 %v224_v0  ;;  %v261_v2 = vld [vmem:[%s469_s3 + $0x38] sm:$0xff]  ;;  %v260_v3 = vld [vmem:[%s469_s3 + $0x30] sm:$0xff]  ;;  %v259_v5 = vld [vmem:[%s469_s3 + $0x28] sm:$0xff]  ;;  %s350_s9 = sshll.u32 %s473_s19, 3  ;;  %vm290_vm2 = vcmask 64512  }
   0xd   : > { %278 = vmatpush.msra.mxu1 %v261_v2  ;;  %v221_v6 = vld [vmem:[%s467_s1] sm:$0xff]  ;;  %s215_s12 = scalar_lea.vmem %s466_s0, %s350_s9  ;;  %v257_v9 = vld [vmem:[%s469_s3 + $0x18] sm:$0xff]  ;;  %v256_v10 = vld [vmem:[%s469_s3 + $0x10] sm:$0xff]  ;;  %s219_s30 = scalar_lea.vmem %s471_s5, %s350_s9 }
   0xe   : > { %246 = vmatpush.msra.mxu0 %v223_v1  ;;  %v258_v7 = vld [vmem:[%s469_s3 + $0x20] sm:$0xff]  ;;  %v255_v11 = vld [vmem:[%s469_s3 + $0x8] sm:$0xff] }
   0xf   : > { %279 = vmatpush.msra.mxu1 %v260_v3  ;;  %v220_v8 = vld [vmem:[%s215_s12] sm:$0xff] }
  0x10   : > { %247 = vmatpush.msra.mxu0 %v222_v4  ;;  %v254_v12 = vld [vmem:[%s469_s3] sm:$0xff] }
  0x11   : > { %280 = vmatpush.msra.mxu1 %v259_v5  ;;  %v364_v13 = vld [vmem:[%s468_s2] ss:$0 sm:$0xff] }
  0x12   : > { %248 = vmatpush.msra.mxu0 %v221_v6  ;;  %v365_v17 = vld [vmem:[%s470_s4] ss:$0 sm:$0xff] }
  0x13   : > { %352 = vmatmul.msk.f32.vlgmr.msra.gmra.mxu0 %vm229_vm0, %v220_v8  ;;  %281 = vmatpush.msra.mxu1 %v258_v7 }
  0x15   : > { %282 = vmatpush.msra.mxu1 %v257_v9 }
  0x17   : > { %283 = vmatpush.msra.mxu1 %v256_v10 }
  0x19   : > { %284 = vmatpush.msra.mxu1 %v255_v11 }
  0x1b   : > { %285 = vmatpush.msra.mxu1 %v254_v12 }
  0x90   : > { %v250_v14 = vpop.f32.mrf.mxu0 }
  0x91   : > { %v251_v15 = vadd.f32 %v364_v13, %v250_v14 }
  0x93   : > { %v253_v16 = vmax.f32 %v251_v15, 0.0 }
  0x95   : > { %353 = vmatmul.msk.f32.vlgmr.msra.gmra.mxu1 %vm266_vm1, %v253_v16 }
 0x112   : > { %v287_v18 = vpop.f32.mrf.mxu1 }
 0x113   : > { %v288_v19 = vadd.f32 %v365_v17, %v287_v18 }
 0x115   : > { %291 = vst.msk [vmem:[%s219_s30] sm:$0xff] %vm290_vm2, %v288_v19 }
 0x116 PF: > { %s15_s18 = sadd.s32 1, %s372_s18  }
 0x117   : > { %p12_p4 = scmp.ge.s32.totalorder %s15_s18, 4  }
 0x119   :  { %14 = sbr.rel (!%p12_p4) target bundleno = 1 (0x1), region = 70 }

</bundles_post_ra>
